<compile_context>
chip_gen: v7x
topology: tpu7x:2x2x1
jax: 0.10.0
libtpu: 0.0.40
codegen_flags: <defaults>
</compile_context>

<pallas_src>
import jax
import jax.numpy as jnp
from jax.experimental import pallas as pl
from jax.experimental.pallas import tpu as pltpu


def policy_kernel(state_ref, w1_ref, b1_ref, w2_ref, b2_ref, w3_ref, b3_ref,
                  mean_ref):
    x = state_ref[...]                                            # [TB, S]

    # fc1 + ReLU
    h1 = jnp.dot(x, w1_ref[...], preferred_element_type=jnp.float32)
    h1 = jnp.maximum(h1 + b1_ref[...], 0.0)                       # [TB, 64]

    # fc2 + ReLU
    h2 = jnp.dot(h1, w2_ref[...], preferred_element_type=jnp.float32)
    h2 = jnp.maximum(h2 + b2_ref[...], 0.0)                       # [TB, 32]

    # fc3 (mean head)
    mean = jnp.dot(h2, w3_ref[...], preferred_element_type=jnp.float32)
    mean_ref[...] = (mean + b3_ref[...]).astype(mean_ref.dtype)   # [TB, A]


def _cdiv(a, b):
    return -(-a // b)


def _round_up(x, m):
    return _cdiv(x, m) * m


def policy_forward(state, params, *, tb=4096):
    """state: [B, state_dim] float32. Returns (mean [B, A], std [A])."""
    w1, b1, w2, b2, w3, b3, log_std = params
    B, S = state.shape
    A = w3.shape[1]

    # ---- batch tiling --------------------------------------------------
    # Aim for an even number of grid steps when there is enough work (so the
    # two TensorCores on v7x are balanced); otherwise a single tile. Tiles are
    # multiples of 8 (sublane). Ragged tails are handled by Pallas boundary
    # padding / masked writes, so no wrapper-side pad, copy, or slice.
    if B <= tb:
        grid_n = 2 if B >= 64 else 1
    else:
        grid_n = _cdiv(B, tb)
        if grid_n % 2:
            grid_n += 1
    TB = _round_up(_cdiv(B, grid_n), 8)
    grid_n = _cdiv(B, TB)

    tiled = lambda shape: pl.BlockSpec(shape, lambda i: (i, 0))       # batch-tiled
    resident = lambda shape: pl.BlockSpec(shape, lambda i: (0, 0),    # VMEM-resident
                                          pipeline_mode=pl.Buffered(1))

    mean = pl.pallas_call(
        policy_kernel,
        out_shape=jax.ShapeDtypeStruct((B, A), jnp.float32),
        grid=(grid_n,),
        in_specs=[
            tiled((TB, S)),
            resident(w1.shape), resident(b1.shape),
            resident(w2.shape), resident(b2.shape),
            resident(w3.shape), resident(b3.shape),
        ],
        out_specs=tiled((TB, A)),
        compiler_params=pltpu.CompilerParams(
            dimension_semantics=("parallel",)),
    )(state, w1, b1, w2, b2, w3, b3)

    # std head: batch-independent, tiny — computed in plain JAX (fused by XLA).
    std = jnp.exp(jnp.clip(log_std, -2.0, 0.6)).reshape(A)
    return mean, std


def init_params(key, state_dim, action_dim):
    """Deterministic synthetic parameters matching PolicyNetwork's shapes."""
    k1, k2, k3, k4, k5, k6 = jax.random.split(key, 6)

    def linear(kw, kb, fan_in, fan_out):
        # PyTorch nn.Linear default: U(-1/sqrt(fan_in), 1/sqrt(fan_in))
        bound = 1.0 / jnp.sqrt(jnp.float32(fan_in))
        w = jax.random.uniform(kw, (fan_in, fan_out), jnp.float32, -bound, bound)
        b = jax.random.uniform(kb, (1, fan_out), jnp.float32, -bound, bound)
        return w, b

    w1, b1 = linear(k1, k2, state_dim, 64)
    w2, b2 = linear(k3, k4, 64, 32)
    w3, b3 = linear(k5, k6, 32, action_dim)
    log_std = jnp.full((1, action_dim), 0.15, dtype=jnp.float32)
    return (w1, b1, w2, b2, w3, b3, log_std)


if __name__ == "__main__":
    state_dim, action_dim = 16, 4

    key = jax.random.PRNGKey(0)
    k_params, k_state = jax.random.split(key)
    params = init_params(k_params, state_dim, action_dim)
    w1, b1, w2, b2, w3, b3, log_std = params

    # batch=8: exact single tile; batch=72: two grid steps + ragged tail
    for batch in (8, 72):
        state = jax.random.normal(jax.random.fold_in(k_state, batch),
                                  (batch, state_dim), dtype=jnp.float32)

        mean, std = policy_forward(state, params)
        jax.block_until_ready((mean, std))

        # reference check in plain JAX
        h1 = jnp.maximum(state @ w1 + b1, 0.0)
        h2 = jnp.maximum(h1 @ w2 + b2, 0.0)
        mean_ref = h2 @ w3 + b3
        std_ref = jnp.exp(jnp.clip(log_std, -2.0, 0.6)).reshape(action_dim)

        assert mean.shape == (batch, action_dim)
        assert std.shape == (action_dim,)
        assert jnp.allclose(mean, mean_ref, atol=1e-5)
        assert jnp.allclose(std, std_ref, atol=1e-6)

    print("KERNEL_OK")
</pallas_src>

<mosaic_0001>
module attributes {stable_mosaic.version = 11 : i64} {
  func.func @policy_kernel(%arg0: i32, %arg1: memref<8x16xf32, #tpu.memory_space<vmem>>, %arg2: memref<16x64xf32, #tpu.memory_space<vmem>>, %arg3: memref<1x64xf32, #tpu.memory_space<vmem>>, %arg4: memref<64x32xf32, #tpu.memory_space<vmem>>, %arg5: memref<1x32xf32, #tpu.memory_space<vmem>>, %arg6: memref<32x4xf32, #tpu.memory_space<vmem>>, %arg7: memref<1x4xf32, #tpu.memory_space<vmem>>, %arg8: memref<8x4xf32, #tpu.memory_space<vmem>>) attributes {dimension_semantics = [#tpu.dimension_semantics<parallel>], iteration_bounds = array<i64: 1>, scalar_prefetch = 0 : i64, scratch_operands = 0 : i64, tpu.core_type = #tpu.core_type<tc>, window_params = [{transform_indices = @transform_0, window_bounds = array<i64: 8, 16>}, {pipeline_mode = #tpu.pipeline_mode<synchronous>, transform_indices = @transform_1, window_bounds = array<i64: 16, 64>}, {pipeline_mode = #tpu.pipeline_mode<synchronous>, transform_indices = @transform_2, window_bounds = array<i64: 1, 64>}, {pipeline_mode = #tpu.pipeline_mode<synchronous>, transform_indices = @transform_3, window_bounds = array<i64: 64, 32>}, {pipeline_mode = #tpu.pipeline_mode<synchronous>, transform_indices = @transform_4, window_bounds = array<i64: 1, 32>}, {pipeline_mode = #tpu.pipeline_mode<synchronous>, transform_indices = @transform_5, window_bounds = array<i64: 32, 4>}, {pipeline_mode = #tpu.pipeline_mode<synchronous>, transform_indices = @transform_6, window_bounds = array<i64: 1, 4>}, {transform_indices = @transform_7, window_bounds = array<i64: 8, 4>}]} {
    %c0 = arith.constant 0 : index
    %c0_0 = arith.constant 0 : index
    %0 = vector.load %arg1[%c0, %c0_0] : memref<8x16xf32, #tpu.memory_space<vmem>>, vector<8x16xf32>
    %c0_1 = arith.constant 0 : index
    %c0_2 = arith.constant 0 : index
    %1 = vector.load %arg2[%c0_1, %c0_2] : memref<16x64xf32, #tpu.memory_space<vmem>>, vector<16x64xf32>
    %cst = arith.constant dense<0.000000e+00> : vector<8x64xf32>
    %2 = tpu.matmul %0, %1, %cst {dimension_numbers = #tpu.dot_dimension_numbers<[1], [0], [0], [1], [0, 0, 1, 1], [], []>} : vector<8x16xf32>, vector<16x64xf32>, vector<8x64xf32> -> vector<8x64xf32>
    %c0_3 = arith.constant 0 : index
    %c0_4 = arith.constant 0 : index
    %3 = vector.load %arg3[%c0_3, %c0_4] : memref<1x64xf32, #tpu.memory_space<vmem>>, vector<1x64xf32>
    %4 = vector.broadcast %3 : vector<1x64xf32> to vector<8x64xf32>
    %5 = arith.addf %2, %4 : vector<8x64xf32>
    %cst_5 = arith.constant 0.000000e+00 : f32
    %6 = vector.broadcast %cst_5 : f32 to vector<8x64xf32>
    %7 = arith.maximumf %5, %6 : vector<8x64xf32>
    %c0_6 = arith.constant 0 : index
    %c0_7 = arith.constant 0 : index
    %8 = vector.load %arg4[%c0_6, %c0_7] : memref<64x32xf32, #tpu.memory_space<vmem>>, vector<64x32xf32>
    %cst_8 = arith.constant dense<0.000000e+00> : vector<8x32xf32>
    %9 = tpu.matmul %7, %8, %cst_8 {dimension_numbers = #tpu.dot_dimension_numbers<[1], [0], [0], [1], [0, 0, 1, 1], [], []>} : vector<8x64xf32>, vector<64x32xf32>, vector<8x32xf32> -> vector<8x32xf32>
    %c0_9 = arith.constant 0 : index
    %c0_10 = arith.constant 0 : index
    %10 = vector.load %arg5[%c0_9, %c0_10] : memref<1x32xf32, #tpu.memory_space<vmem>>, vector<1x32xf32>
    %11 = vector.broadcast %10 : vector<1x32xf32> to vector<8x32xf32>
    %12 = arith.addf %9, %11 : vector<8x32xf32>
    %cst_11 = arith.constant 0.000000e+00 : f32
    %13 = vector.broadcast %cst_11 : f32 to vector<8x32xf32>
    %14 = arith.maximumf %12, %13 : vector<8x32xf32>
    %c0_12 = arith.constant 0 : index
    %c0_13 = arith.constant 0 : index
    %15 = vector.load %arg6[%c0_12, %c0_13] : memref<32x4xf32, #tpu.memory_space<vmem>>, vector<32x4xf32>
    %cst_14 = arith.constant dense<0.000000e+00> : vector<8x4xf32>
    %16 = tpu.matmul %14, %15, %cst_14 {dimension_numbers = #tpu.dot_dimension_numbers<[1], [0], [0], [1], [0, 0, 1, 1], [], []>} : vector<8x32xf32>, vector<32x4xf32>, vector<8x4xf32> -> vector<8x4xf32>
    %c0_15 = arith.constant 0 : index
    %c0_16 = arith.constant 0 : index
    %17 = vector.load %arg7[%c0_15, %c0_16] : memref<1x4xf32, #tpu.memory_space<vmem>>, vector<1x4xf32>
    %18 = vector.broadcast %17 : vector<1x4xf32> to vector<8x4xf32>
    %19 = arith.addf %16, %18 : vector<8x4xf32>
    %c0_17 = arith.constant 0 : index
    %c0_18 = arith.constant 0 : index
    %20 = vector.load %arg8[%c0_17, %c0_18] : memref<8x4xf32, #tpu.memory_space<vmem>>, vector<8x4xf32>
    tpu.vector_store %arg8[%c0_17, %c0_18], %19 {strides = array<i32>} : memref<8x4xf32, #tpu.memory_space<vmem>>, vector<8x4xf32>,
    return
  }
  func.func @transform_0(%arg0: i32) -> (i32, i32) {
    %c0_i32 = arith.constant 0 : i32
    %c0_i32_0 = arith.constant 0 : i32
    return %arg0, %c0_i32 : i32, i32
  }
  func.func @transform_1(%arg0: i32) -> (i32, i32) {
    %c0_i32 = arith.constant 0 : i32
    %c0_i32_0 = arith.constant 0 : i32
    %c0_i32_1 = arith.constant 0 : i32
    return %c0_i32, %c0_i32_0 : i32, i32
  }
  func.func @transform_2(%arg0: i32) -> (i32, i32) {
    %c0_i32 = arith.constant 0 : i32
    %c0_i32_0 = arith.constant 0 : i32
    %c0_i32_1 = arith.constant 0 : i32
    return %c0_i32, %c0_i32_0 : i32, i32
  }
  func.func @transform_3(%arg0: i32) -> (i32, i32) {
    %c0_i32 = arith.constant 0 : i32
    %c0_i32_0 = arith.constant 0 : i32
    %c0_i32_1 = arith.constant 0 : i32
    return %c0_i32, %c0_i32_0 : i32, i32
  }
  func.func @transform_4(%arg0: i32) -> (i32, i32) {
    %c0_i32 = arith.constant 0 : i32
    %c0_i32_0 = arith.constant 0 : i32
    %c0_i32_1 = arith.constant 0 : i32
    return %c0_i32, %c0_i32_0 : i32, i32
  }
  func.func @transform_5(%arg0: i32) -> (i32, i32) {
    %c0_i32 = arith.constant 0 : i32
    %c0_i32_0 = arith.constant 0 : i32
    %c0_i32_1 = arith.constant 0 : i32
    return %c0_i32, %c0_i32_0 : i32, i32
  }
  func.func @transform_6(%arg0: i32) -> (i32, i32) {
    %c0_i32 = arith.constant 0 : i32
    %c0_i32_0 = arith.constant 0 : i32
    %c0_i32_1 = arith.constant 0 : i32
    return %c0_i32, %c0_i32_0 : i32, i32
  }
  func.func @transform_7(%arg0: i32) -> (i32, i32) {
    %c0_i32 = arith.constant 0 : i32
    %c0_i32_0 = arith.constant 0 : i32
    return %arg0, %c0_i32 : i32, i32
  }
}

</mosaic_0001>

<bundles_post_ra>
// kernel: tpu_custom_call.1
= control target key start
LH: loop header
LB: loop body
LE: loop exit
PB: predicated region body
PF: predicated region fallthrough
CT: control target
= control target key end

     0   :  { %v376_v0 = vmov 0.0|0.0   ;;  %vm377_vm0 = vmmov 0   ;;  %v378_v3 = vmov 0.0   ;;  %vm36_vm1 = vcmask 130048   ;;  %s479_s1 = inlined_call_operand.vmem [shape: f32[16,64], index: 1, kind: input, shape index: {}]   ;;  %s480_s3 = inlined_call_operand.vmem [shape: f32[64,32], index: 3, kind: input, shape index: {}]   ;;  %s481_s0 = inlined_call_operand.vmem [shape: f32[8,16], index: 0, kind: input, shape index: {}]   ;;  %s482_s5 = inlined_call_operand.vmem [shape: f32[32,4], index: 5, kind: input, shape index: {}]   ;;  %s483_s2 = inlined_call_operand.vmem [shape: f32[1,64], index: 2, kind: input, shape index: {}]   ;;  %s484_s4 = inlined_call_operand.vmem [shape: f32[1,32], index: 4, kind: input, shape index: {}]   ;;  %s485_s6 = inlined_call_operand.vmem [shape: f32[1,4], index: 6, kind: input, shape index: {}]   ;;  %s486_s7 = inlined_call_operand.vmem [shape: f32[8,4], index: 7, kind: output, shape index: {}]  }
   0x1   :  { %352 = vmatprep.subr.bf16.mxu0 %v376_v0  ;;  %v27_v1 = vld [vmem:[%s479_s1] sm:$0xff]  ;;  %v28_v2 = vld [vmem:[%s479_s1 + $0x8] sm:$0xff]  ;;  %319 = vmatprep.mubr.msk.f32.mxu0 %vm377_vm0, %v378_v3  ;;  %v113_v7 = vld [vmem:[%s480_s3 + $0x10] sm:$0xff]  ;;  %vm126_vm2 = vcmask 523264   ;;  %vm212_vm3 = vcmask 261120   ;;  %vm286_vm4 = vcmask 31744  }
   0x2   :  { %v353_v4 = vpack.c.bf16 %v28_v2, %v27_v1  ;;  %355 = vmatprep.subr.bf16.mxu1 %v376_v0  ;;  %v111_v5 = vld [vmem:[%s480_s3] sm:$0xff]  ;;  %v112_v6 = vld [vmem:[%s480_s3 + $0x8] sm:$0xff]  ;;  %338 = vmatprep.mubr.msk.f32.mxu1 %vm377_vm0, %v378_v3  ;;  %v114_v9 = vld [vmem:[%s480_s3 + $0x18] sm:$0xff] }
   0x3   :  { %v356_v8 = vpack.c.bf16 %v112_v6, %v111_v5  ;;  %v26_v10 = vld [vmem:[%s481_s0] sm:$0xff]  ;;  %v359_v11 = vpack.c.bf16 %v114_v9, %v113_v7  ;;  %v116_v13 = vld [vmem:[%s480_s3 + $0x28] sm:$0xff]  ;;  %v117_v15 = vld [vmem:[%s480_s3 + $0x30] sm:$0xff] }
   0x4   :  { %354 = vmatpush3.bf16.msra.mxu0 %v353_v4  ;;  %v115_v12 = vld [vmem:[%s480_s3 + $0x20] sm:$0xff]  ;;  %v118_v16 = vld [vmem:[%s480_s3 + $0x38] sm:$0xff]  ;;  %v202_v19 = vld [vmem:[%s482_s5 + $0x8] sm:$0xff] }
   0x5   :  { %357 = vmatpush3.bf16.msra.mxu1 %v356_v8  ;;  %367 = vmatprep.subr.bf16.mxu0 %v376_v0  ;;  %v362_v14 = vpack.c.bf16 %v116_v13, %v115_v12  ;;  %v365_v17 = vpack.c.bf16 %v118_v16, %v117_v15  ;;  %v201_v18 = vld [vmem:[%s482_s5] sm:$0xff]  ;;  %v203_v26 = vld [vmem:[%s482_s5 + $0x10] sm:$0xff]  ;;  %v204_v27 = vld [vmem:[%s482_s5 + $0x18] sm:$0xff] }
   0x6   :  { %358 = vmatprep.subr.bf16.mxu1 %v376_v0  ;;  %v368_v20 = vpack.c.bf16 %v202_v19, %v201_v18  ;;  %v292_v21 = vld [vmem:[%s483_s2] ss:$0 sm:$0xff]  ;;  %v371_v28 = vpack.c.bf16 %v204_v27, %v203_v26 }
   0x7   :  { %320 = vmatmul.mubr.msk.f32.vlgmr.msra.gmra.mrb[0].mxu0 %vm36_vm1, %v26_v10  ;;  %v294_v29 = vld [vmem:[%s484_s4] ss:$0 sm:$0xff] }
   0x8   :  { %349 = vmatprep.mubr.msk.f32.mxu0 %vm377_vm0, %v378_v3  ;;  %369 = vmatpush3.bf16.msra.mxu0 %v368_v20  ;;  %v296_v34 = vld [vmem:[%s485_s6] ss:$0 sm:$0xff] }
   0x9   :  { %360 = vmatpush3.bf16.msra.mxu1 %v359_v11  ;;  %370 = vmatprep.subr.bf16.mxu0 %v376_v0 }
   0xa   :  { %361 = vmatprep.subr.bf16.mxu1 %v376_v0 }
   0xc   :  { %372 = vmatpush3.bf16.msra.mxu0 %v371_v28 }
   0xd   :  { %363 = vmatpush3.bf16.msra.mxu1 %v362_v14 }
   0xe   :  { %364 = vmatprep.subr.bf16.mxu1 %v376_v0 }
  0x11   :  { %366 = vmatpush3.bf16.msra.mxu1 %v365_v17 }
  0xda   :  { %v106_v22 = vpop.f32.mrb[0].mxu0 }
  0xdb   :  { %v107_v23 = vadd.f32 %v292_v21, %v106_v22  ;;  %v321_v24 = vpop.f32.mrb[1].mxu0 }
  0xdd   :  { %v110_v25 = vmax.f32 %v107_v23, 0.0 }
  0xdf   :  { %339 = vmatmul.mubr.msk.f32.vlgmr.msra.gmra.mrb[0].mxu1 %vm126_vm2, %v110_v25 }
 0x1b2   :  { %v196_v30 = vpop.f32.mrb[0].mxu1 }
 0x1b3   :  { %v197_v31 = vadd.f32 %v294_v29, %v196_v30  ;;  %v340_v32 = vpop.f32.mrb[1].mxu1 }
 0x1b5   :  { %v200_v33 = vmax.f32 %v197_v31, 0.0 }
 0x1b7   :  { %350 = vmatmul.mubr.msk.f32.vlgmr.msra.gmra.mrb[2].mxu0 %vm212_vm3, %v200_v33 }
 0x28a   :  { %v282_v35 = vpop.f32.mrb[2].mxu0 }
 0x28b   :  { %v283_v36 = vadd.f32 %v296_v34, %v282_v35  ;;  %v351_v37 = vpop.f32.mrb[3].mxu0 }
 0x28d   :  { %287 = vst.msk [vmem:[%s486_s7] sm:$0xff] %vm286_vm4, %v283_v36 }

</bundles_post_ra>
